<compile_context>
chip_gen: v5e
topology: v5e:2x2
jax: 0.10.0
libtpu: 0.0.40
codegen_flags: <defaults>
</compile_context>

<pallas_src>
import functools
import math

import jax
import jax.numpy as jnp
from jax import lax
from jax.experimental import pallas as pl
from jax.experimental.pallas import tpu as pltpu


# ----------------------------------------------------------------------------
# Kernels
# ----------------------------------------------------------------------------
def _ffn_body(x, wi, bi, wo, bo, mask_full, compute_dtype):
    # hidden = relu(x @ Wi^T + bi); Wi kept in its original (Dff, Dm) layout,
    # so contract on dim 1 of both operands (no host-side transpose).
    h = lax.dot_general(x.astype(compute_dtype), wi,
                        dimension_numbers=(((1,), (1,)), ((), ())),
                        preferred_element_type=jnp.float32)
    h = jnp.maximum(h + bi, 0.0)
    if mask_full is not None:
        h = h * mask_full
    out = lax.dot_general(h.astype(compute_dtype), wo,
                          dimension_numbers=(((1,), (1,)), ((), ())),
                          preferred_element_type=jnp.float32)
    return out + bo


def _ffn_kernel(x_ref, wi_ref, bi_ref, wo_ref, bo_ref, o_ref, *, compute_dtype):
    out = _ffn_body(x_ref[...], wi_ref[...], bi_ref[...], wo_ref[...],
                    bo_ref[...], None, compute_dtype)
    o_ref[...] = out.astype(o_ref.dtype)


def _ffn_vardrop_kernel(x_ref, wi_ref, bi_ref, wo_ref, bo_ref, mask_ref, o_ref,
                        *, compute_dtype, batch):
    """Variational dropout: mask_ref is (batch, Dff) f32, pre-scaled by 1/(1-p).

    Rows of the flattened (T*B, Dm) input cycle through batches with period B
    (row m -> batch m % B) and tm % B == 0, so row r of this tile uses mask
    row (r % B). The expansion is done in-kernel (iota + select) so only
    B*Dff f32 values ever live in VMEM for the mask.
    """
    tm = x_ref.shape[0]
    dff = mask_ref.shape[1]
    m = mask_ref[...]                                        # (batch, Dff) f32
    if batch == 1:
        mask_full = jnp.broadcast_to(m, (tm, dff))
    else:
        row_ids = lax.broadcasted_iota(jnp.int32, (tm, dff), 0)
        if batch & (batch - 1) == 0:                         # power of two
            row_b = row_ids & (batch - 1)
        else:
            row_b = row_ids % batch
        mask_full = jnp.zeros((tm, dff), jnp.float32)
        for b in range(batch):
            mask_full = jnp.where(row_b == b, m[b:b + 1, :], mask_full)
    out = _ffn_body(x_ref[...], wi_ref[...], bi_ref[...], wo_ref[...],
                    bo_ref[...], mask_full, compute_dtype)
    o_ref[...] = out.astype(o_ref.dtype)


def _ffn_dropout_kernel(x_ref, wi_ref, bi_ref, wo_ref, bo_ref, mask_ref, o_ref,
                        *, compute_dtype):
    """Non-variational path: per-row mask streamed from HBM."""
    out = _ffn_body(x_ref[...], wi_ref[...], bi_ref[...], wo_ref[...],
                    bo_ref[...], mask_ref[...], compute_dtype)
    o_ref[...] = out.astype(o_ref.dtype)


# ----------------------------------------------------------------------------
# Wrapper helpers
# ----------------------------------------------------------------------------
def _pick_tm(M, B, sublane, target=512):
    """Row-tile size: multiple of lcm(sublane, B); full extent for small M."""
    step = (sublane * B) // math.gcd(sublane, B)
    if M <= max(target, step):
        return M, step
    tm = max((target // step) * step, step)
    return min(tm, M), step


def _vmem_bytes(tm, Dm, Dff, B, x_item, w_item, out_item, mask_kind,
                single_buffer):
    f32 = 4
    wbuf = 1 if single_buffer else 2
    n = 2 * tm * Dm * x_item                 # x tiles (double-buffered)
    n += 2 * tm * Dm * out_item              # output tiles
    n += wbuf * 2 * Dm * Dff * w_item        # W_in + W_out (resident)
    n += wbuf * (Dff + Dm) * f32             # biases
    if mask_kind == "variational":
        n += wbuf * B * Dff * f32            # (B, Dff) keep-mask
        n += tm * Dff * f32                  # in-kernel expanded mask
    elif mask_kind == "dense":
        n += 2 * tm * Dff * f32              # streamed (tm, Dff) mask
    n += 2 * tm * Dff * f32                  # f32 hidden + compute-dtype copy
    return n


# ----------------------------------------------------------------------------
# Wrapper
# ----------------------------------------------------------------------------
def feed_forward_relu(x, input_weights, input_biases, output_weights,
                      output_biases, dropout=0.1, training=True,
                      variational=True, rng_key=None, seed=0,
                      matmul_dtype=jnp.bfloat16):
    x = jnp.asarray(x)
    T, B, Dm = x.shape
    Dff = input_weights.shape[0]
    M = T * B
    out_dtype = x.dtype
    cdtype = jnp.dtype(out_dtype if matmul_dtype is None else matmul_dtype)

    # MXU-friendly operands. Weights keep their original (out, in) layout
    # (no host transpose); only a cheap elementwise cast to the compute dtype.
    x2 = x.reshape(M, Dm)                                   # cast per-tile in kernel
    wi = jnp.asarray(input_weights).astype(cdtype)          # (Dff, Dm)
    wo = jnp.asarray(output_weights).astype(cdtype)         # (Dm, Dff)
    bi = jnp.asarray(input_biases).reshape(1, Dff).astype(jnp.float32)
    bo = jnp.asarray(output_biases).reshape(1, Dm).astype(jnp.float32)

    sublane = 16 if jnp.dtype(cdtype).itemsize < 4 else 8
    tm, step = _pick_tm(M, B, sublane)

    apply_mask = bool(training) and float(dropout) > 0.0
    mask_kind = ("variational" if variational else "dense") if apply_mask else "none"

    # Generation-aware VMEM budget (v7x: 64 MiB/TC vs 128 MiB on v5e/v6e).
    try:
        vmem_cap = int(pltpu.get_tpu_info().vmem_capacity_bytes)
    except Exception:
        vmem_cap = 64 << 20                                  # conservative (v7x)
    budget = vmem_cap - (8 << 20)

    x_item = jnp.dtype(out_dtype).itemsize
    w_item = jnp.dtype(cdtype).itemsize
    while (tm >= 2 * step and
           _vmem_bytes(tm, Dm, Dff, B, x_item, w_item, x_item, mask_kind,
                       True) > budget):
        tm = max(step, ((tm // 2) // step) * step)
    # TODO(synk): for FFNs whose weights alone exceed VMEM, add a second grid
    # axis over Dff chunks with an f32 output accumulator instead of shrinking tm.

    n_tiles = pl.cdiv(M, tm)

    # Dropout keep-mask drawn host-side with jax.random.
    # TODO(synk): torch's dropout RNG stream cannot be reproduced bit-exactly;
    # callers should pass a fresh rng_key per forward for independent masks.
    args = [x2, wi, bi, wo, bo]
    keep_p = 1.0 - float(dropout)
    mask = None
    if apply_mask:
        if rng_key is None:
            rng_key = jax.random.PRNGKey(seed)
        if variational:
            keep = jax.random.bernoulli(rng_key, p=keep_p, shape=(B, Dff))
            mask = keep.astype(jnp.float32) * (1.0 / keep_p)  # exact f32 scale
        else:
            # TODO(synk): generate this mask in-kernel (pltpu.prng_random_bits)
            # to avoid streaming an (M, Dff) f32 mask from HBM.
            keep = jax.random.bernoulli(rng_key, p=keep_p, shape=(M, Dff))
            mask = keep.astype(jnp.float32) * (1.0 / keep_p)
            pad = n_tiles * tm - M
            if pad:
                mask = jnp.pad(mask, ((0, pad), (0, 0)))
        args.append(mask)

    if mask_kind == "variational":
        kernel = functools.partial(_ffn_vardrop_kernel, compute_dtype=cdtype,
                                   batch=B)
    elif mask_kind == "dense":
        kernel = functools.partial(_ffn_dropout_kernel, compute_dtype=cdtype)
    else:
        kernel = functools.partial(_ffn_kernel, compute_dtype=cdtype)

    vmem_need = _vmem_bytes(tm, Dm, Dff, B, x_item, w_item, x_item, mask_kind,
                            True) + (4 << 20)
    vmem_limit = int(min(max(vmem_need, 16 << 20), budget))

    flops = 4 * M * Dm * Dff                                 # two matmuls
    bytes_accessed = (M * Dm * (x_item + x_item)             # x in + out
                      + 2 * Dm * Dff * w_item                # weights
                      + (Dff + Dm) * 4                       # biases
                      + (int(mask.size) * 4 if mask is not None else 0))
    cost = pl.CostEstimate(flops=int(flops), transcendentals=0,
                           bytes_accessed=int(bytes_accessed))

    def _call(single_buffer):
        def const_spec(shape):
            ndims = len(shape)
            imap = lambda i, _n=ndims: (0,) * _n
            if single_buffer:
                return pl.BlockSpec(shape, imap, pipeline_mode=pl.Buffered(1))
            return pl.BlockSpec(shape, imap)

        in_specs = [
            pl.BlockSpec((tm, Dm), lambda i: (i, 0)),        # x tile (streams)
            const_spec((Dff, Dm)),                           # W_in  (resident)
            const_spec((1, Dff)),                            # b_in
            const_spec((Dm, Dff)),                           # W_out (resident)
            const_spec((1, Dm)),                             # b_out
        ]
        if mask_kind == "variational":
            in_specs.append(const_spec((B, Dff)))            # (B, Dff) keep-mask
        elif mask_kind == "dense":
            in_specs.append(pl.BlockSpec((tm, Dff), lambda i: (i, 0)))

        grid_spec = pltpu.PrefetchScalarGridSpec(
            num_scalar_prefetch=0,
            grid=(n_tiles,),
            in_specs=in_specs,
            out_specs=pl.BlockSpec((tm, Dm), lambda i: (i, 0)),
        )
        return pl.pallas_call(
            kernel,
            out_shape=jax.ShapeDtypeStruct((M, Dm), out_dtype),
            grid_spec=grid_spec,
            compiler_params=pltpu.CompilerParams(
                dimension_semantics=("parallel",),
                vmem_limit_bytes=vmem_limit),
            cost_estimate=cost,
        )(*args)

    try:
        out2 = _call(single_buffer=True)
    except Exception:
        # pl.Buffered(1) not accepted by this JAX version — fall back to the
        # default double-buffered pipeline (identical numerics).
        out2 = _call(single_buffer=False)

    return out2.reshape(T, B, Dm)


def test_feed_forward(inp, input_weights, input_biases, output_weights,
                      output_biases, rng_key=None):
    """TestFeedForward.forward with module defaults (training=True as a freshly
    constructed nn.Module, dropout=0.1, variational=True)."""
    return feed_forward_relu(inp, input_weights, input_biases, output_weights,
                             output_biases, dropout=0.1, training=True,
                             variational=True, rng_key=rng_key)


# ----------------------------------------------------------------------------
# Self-test
# ----------------------------------------------------------------------------
if __name__ == "__main__":
    T, B, Dm, Dff = 8, 2, 128, 256

    key = jax.random.PRNGKey(0)
    k1, k2, k3, k4, k5 = jax.random.split(key, 5)
    x = jax.random.normal(k1, (T, B, Dm), dtype=jnp.float32)
    w_in = jax.random.normal(k2, (Dff, Dm), dtype=jnp.float32) / jnp.sqrt(Dm)
    b_in = jax.random.normal(k3, (Dff,), dtype=jnp.float32) * 0.02
    w_out = jax.random.normal(k4, (Dm, Dff), dtype=jnp.float32) / jnp.sqrt(Dff)
    b_out = jax.random.normal(k5, (Dm,), dtype=jnp.float32) * 0.02

    # Pure-JAX reference mirroring the kernel math (cast -> f32-acc matmul).
    def ref_ffn(xx, mask_bd=None, compute_dtype=jnp.bfloat16):
        xc = xx.astype(compute_dtype)
        wic = w_in.astype(compute_dtype)
        woc = w_out.astype(compute_dtype)
        h = jnp.einsum('tbd,fd->tbf', xc, wic,
                       preferred_element_type=jnp.float32) + b_in
        h = jnp.maximum(h, 0.0)
        if mask_bd is not None:
            h = h * mask_bd[None, :, :]
        return jnp.einsum('tbf,df->tbd', h.astype(compute_dtype), woc,
                          preferred_element_type=jnp.float32) + b_out

    # 1) Training forward (module defaults: dropout=0.1, variational=True).
    out_train = jax.block_until_ready(
        test_feed_forward(x, w_in, b_in, w_out, b_out))
    assert out_train.shape == (T, B, Dm)
    assert bool(jnp.all(jnp.isfinite(out_train)))
    keep = jax.random.bernoulli(jax.random.PRNGKey(0), p=0.9, shape=(B, Dff))
    mask_bd = keep.astype(jnp.float32) * (1.0 / 0.9)
    ref_train = ref_ffn(x, mask_bd)
    assert jnp.allclose(out_train, ref_train, atol=1e-2, rtol=1e-2)

    # 2) Eval-mode path (dropout is identity), default bf16 MXU.
    out_eval = jax.block_until_ready(
        feed_forward_relu(x, w_in, b_in, w_out, b_out, dropout=0.1,
                          training=False, variational=True))
    ref_eval = ref_ffn(x, None)
    assert jnp.allclose(out_eval, ref_eval, atol=1e-2, rtol=1e-2)

    # 3) Full-f32 MXU path.
    out_f32 = jax.block_until_ready(
        feed_forward_relu(x, w_in, b_in, w_out, b_out, dropout=0.1,
                          training=False, matmul_dtype=jnp.float32))
    ref_f32 = ref_ffn(x, None, compute_dtype=jnp.float32)
    assert jnp.allclose(out_f32, ref_f32, atol=1e-2, rtol=1e-2)

    print("KERNEL_OK")
</pallas_src>

<mosaic_0001>
module attributes {stable_mosaic.version = 11 : i64} {
  func.func @_ffn_vardrop_kernel(%arg0: i32, %arg1: memref<16x128xf32, #tpu.memory_space<vmem>>, %arg2: memref<256x128xbf16, #tpu.memory_space<vmem>>, %arg3: memref<1x256xf32, #tpu.memory_space<vmem>>, %arg4: memref<128x256xbf16, #tpu.memory_space<vmem>>, %arg5: memref<1x128xf32, #tpu.memory_space<vmem>>, %arg6: memref<2x256xf32, #tpu.memory_space<vmem>>, %arg7: memref<16x128xf32, #tpu.memory_space<vmem>>) attributes {dimension_semantics = [#tpu.dimension_semantics<parallel>], iteration_bounds = array<i64: 1>, scalar_prefetch = 0 : i64, scratch_operands = 0 : i64, tpu.core_type = #tpu.core_type<tc>, window_params = [{transform_indices = @transform_0, window_bounds = array<i64: 16, 128>}, {pipeline_mode = #tpu.pipeline_mode<synchronous>, transform_indices = @transform_1, window_bounds = array<i64: 256, 128>}, {pipeline_mode = #tpu.pipeline_mode<synchronous>, transform_indices = @transform_2, window_bounds = array<i64: 1, 256>}, {pipeline_mode = #tpu.pipeline_mode<synchronous>, transform_indices = @transform_3, window_bounds = array<i64: 128, 256>}, {pipeline_mode = #tpu.pipeline_mode<synchronous>, transform_indices = @transform_4, window_bounds = array<i64: 1, 128>}, {pipeline_mode = #tpu.pipeline_mode<synchronous>, transform_indices = @transform_5, window_bounds = array<i64: 2, 256>}, {transform_indices = @transform_6, window_bounds = array<i64: 16, 128>}]} {
    %c0 = arith.constant 0 : index
    %c0_0 = arith.constant 0 : index
    %0 = vector.load %arg6[%c0, %c0_0] : memref<2x256xf32, #tpu.memory_space<vmem>>, vector<2x256xf32>
    %1 = tpu.iota {dimensions = array<i32: 0>} : vector<16x256xi32>
    %c1_i32 = arith.constant 1 : i32
    %2 = vector.broadcast %c1_i32 : i32 to vector<16x256xi32>
    %3 = arith.andi %1, %2 : vector<16x256xi32>
    %cst = arith.constant 0.000000e+00 : f32
    %4 = vector.broadcast %cst : f32 to vector<16x256xf32>
    %c0_i32 = arith.constant 0 : i32
    %5 = vector.broadcast %c0_i32 : i32 to vector<16x256xi32>
    %6 = arith.cmpi eq, %3, %5 : vector<16x256xi32>
    %7 = vector.extract_strided_slice %0 {offsets = [0, 0], sizes = [1, 256], strides = [1, 1]} : vector<2x256xf32> to vector<1x256xf32>
    %8 = vector.shape_cast %7 : vector<1x256xf32> to vector<1x256xf32>
    %9 = vector.broadcast %8 : vector<1x256xf32> to vector<16x256xf32>
    %10 = arith.select %6, %9, %4 : vector<16x256xi1>, vector<16x256xf32>
    %c1_i32_1 = arith.constant 1 : i32
    %11 = vector.broadcast %c1_i32_1 : i32 to vector<16x256xi32>
    %12 = arith.cmpi eq, %3, %11 : vector<16x256xi32>
    %13 = vector.extract_strided_slice %0 {offsets = [1, 0], sizes = [1, 256], strides = [1, 1]} : vector<2x256xf32> to vector<1x256xf32>
    %14 = vector.shape_cast %13 : vector<1x256xf32> to vector<1x256xf32>
    %15 = vector.broadcast %14 : vector<1x256xf32> to vector<16x256xf32>
    %16 = arith.select %12, %15, %10 : vector<16x256xi1>, vector<16x256xf32>
    %c0_2 = arith.constant 0 : index
    %c0_3 = arith.constant 0 : index
    %17 = vector.load %arg1[%c0_2, %c0_3] : memref<16x128xf32, #tpu.memory_space<vmem>>, vector<16x128xf32>
    %c0_4 = arith.constant 0 : index
    %c0_5 = arith.constant 0 : index
    %18 = vector.load %arg2[%c0_4, %c0_5] : memref<256x128xbf16, #tpu.memory_space<vmem>>, vector<256x128xbf16>
    %c0_6 = arith.constant 0 : index
    %c0_7 = arith.constant 0 : index
    %19 = vector.load %arg3[%c0_6, %c0_7] : memref<1x256xf32, #tpu.memory_space<vmem>>, vector<1x256xf32>
    %c0_8 = arith.constant 0 : index
    %c0_9 = arith.constant 0 : index
    %20 = vector.load %arg4[%c0_8, %c0_9] : memref<128x256xbf16, #tpu.memory_space<vmem>>, vector<128x256xbf16>
    %c0_10 = arith.constant 0 : index
    %c0_11 = arith.constant 0 : index
    %21 = vector.load %arg5[%c0_10, %c0_11] : memref<1x128xf32, #tpu.memory_space<vmem>>, vector<1x128xf32>
    %22 = arith.truncf %17 : vector<16x128xf32> to vector<16x128xbf16>
    %cst_12 = arith.constant dense<0.000000e+00> : vector<16x256xf32>
    %23 = tpu.matmul %22, %18, %cst_12 {dimension_numbers = #tpu.dot_dimension_numbers<[1], [1], [0], [0], [0, 0, 1, 0], [], []>} : vector<16x128xbf16>, vector<256x128xbf16>, vector<16x256xf32> -> vector<16x256xf32>
    %24 = vector.broadcast %19 : vector<1x256xf32> to vector<16x256xf32>
    %25 = arith.addf %23, %24 : vector<16x256xf32>
    %cst_13 = arith.constant 0.000000e+00 : f32
    %26 = vector.broadcast %cst_13 : f32 to vector<16x256xf32>
    %27 = arith.maximumf %25, %26 : vector<16x256xf32>
    %28 = arith.mulf %27, %16 : vector<16x256xf32>
    %29 = arith.truncf %28 : vector<16x256xf32> to vector<16x256xbf16>
    %cst_14 = arith.constant dense<0.000000e+00> : vector<16x128xf32>
    %30 = tpu.matmul %29, %20, %cst_14 {dimension_numbers = #tpu.dot_dimension_numbers<[1], [1], [0], [0], [0, 0, 1, 0], [], []>} : vector<16x256xbf16>, vector<128x256xbf16>, vector<16x128xf32> -> vector<16x128xf32>
    %31 = vector.broadcast %21 : vector<1x128xf32> to vector<16x128xf32>
    %32 = arith.addf %30, %31 : vector<16x128xf32>
    %c0_15 = arith.constant 0 : index
    %c0_16 = arith.constant 0 : index
    %33 = vector.load %arg7[%c0_15, %c0_16] : memref<16x128xf32, #tpu.memory_space<vmem>>, vector<16x128xf32>
    tpu.vector_store %arg7[%c0_15, %c0_16], %32 {strides = array<i32>} : memref<16x128xf32, #tpu.memory_space<vmem>>, vector<16x128xf32>,
    return
  }
  func.func @transform_0(%arg0: i32) -> (i32, i32) {
    %c0_i32 = arith.constant 0 : i32
    %c0_i32_0 = arith.constant 0 : i32
    return %arg0, %c0_i32 : i32, i32
  }
  func.func @transform_1(%arg0: i32) -> (i32, i32) {
    %c0_i32 = arith.constant 0 : i32
    %c0_i32_0 = arith.constant 0 : i32
    %c0_i32_1 = arith.constant 0 : i32
    return %c0_i32, %c0_i32_0 : i32, i32
  }
  func.func @transform_2(%arg0: i32) -> (i32, i32) {
    %c0_i32 = arith.constant 0 : i32
    %c0_i32_0 = arith.constant 0 : i32
    %c0_i32_1 = arith.constant 0 : i32
    return %c0_i32, %c0_i32_0 : i32, i32
  }
  func.func @transform_3(%arg0: i32) -> (i32, i32) {
    %c0_i32 = arith.constant 0 : i32
    %c0_i32_0 = arith.constant 0 : i32
    %c0_i32_1 = arith.constant 0 : i32
    return %c0_i32, %c0_i32_0 : i32, i32
  }
  func.func @transform_4(%arg0: i32) -> (i32, i32) {
    %c0_i32 = arith.constant 0 : i32
    %c0_i32_0 = arith.constant 0 : i32
    %c0_i32_1 = arith.constant 0 : i32
    return %c0_i32, %c0_i32_0 : i32, i32
  }
  func.func @transform_5(%arg0: i32) -> (i32, i32) {
    %c0_i32 = arith.constant 0 : i32
    %c0_i32_0 = arith.constant 0 : i32
    %c0_i32_1 = arith.constant 0 : i32
    return %c0_i32, %c0_i32_0 : i32, i32
  }
  func.func @transform_6(%arg0: i32) -> (i32, i32) {
    %c0_i32 = arith.constant 0 : i32
    %c0_i32_0 = arith.constant 0 : i32
    return %arg0, %c0_i32 : i32, i32
  }
}

module attributes {stable_mosaic.version = 11 : i64} {
  func.func @_ffn_vardrop_kernel(%arg0: i32, %arg1: memref<16x128xf32, #tpu.memory_space<vmem>>, %arg2: memref<256x128xbf16, #tpu.memory_space<vmem>>, %arg3: memref<1x256xf32, #tpu.memory_space<vmem>>, %arg4: memref<128x256xbf16, #tpu.memory_space<vmem>>, %arg5: memref<1x128xf32, #tpu.memory_space<vmem>>, %arg6: memref<2x256xf32, #tpu.memory_space<vmem>>, %arg7: memref<16x128xf32, #tpu.memory_space<vmem>>) attributes {dimension_semantics = [#tpu.dimension_semantics<parallel>], iteration_bounds = array<i64: 1>, scalar_prefetch = 0 : i64, scratch_operands = 0 : i64, tpu.core_type = #tpu.core_type<tc>, window_params = [{transform_indices = @transform_0, window_bounds = array<i64: 16, 128>}, {pipeline_mode = #tpu.pipeline_mode<synchronous>, transform_indices = @transform_1, window_bounds = array<i64: 256, 128>}, {pipeline_mode = #tpu.pipeline_mode<synchronous>, transform_indices = @transform_2, window_bounds = array<i64: 1, 256>}, {pipeline_mode = #tpu.pipeline_mode<synchronous>, transform_indices = @transform_3, window_bounds = array<i64: 128, 256>}, {pipeline_mode = #tpu.pipeline_mode<synchronous>, transform_indices = @transform_4, window_bounds = array<i64: 1, 128>}, {pipeline_mode = #tpu.pipeline_mode<synchronous>, transform_indices = @transform_5, window_bounds = array<i64: 2, 256>}, {transform_indices = @transform_6, window_bounds = array<i64: 16, 128>}]} {
    %c0 = arith.constant 0 : index
    %c0_0 = arith.constant 0 : index
    %0 = vector.load %arg6[%c0, %c0_0] : memref<2x256xf32, #tpu.memory_space<vmem>>, vector<2x256xf32>
    %1 = tpu.iota {dimensions = array<i32: 0>} : vector<16x256xi32>
    %c1_i32 = arith.constant 1 : i32
    %2 = vector.broadcast %c1_i32 : i32 to vector<16x256xi32>
    %3 = arith.andi %1, %2 : vector<16x256xi32>
    %cst = arith.constant 0.000000e+00 : f32
    %4 = vector.broadcast %cst : f32 to vector<16x256xf32>
    %c0_i32 = arith.constant 0 : i32
    %5 = vector.broadcast %c0_i32 : i32 to vector<16x256xi32>
    %6 = arith.cmpi eq, %3, %5 : vector<16x256xi32>
    %7 = vector.extract_strided_slice %0 {offsets = [0, 0], sizes = [1, 256], strides = [1, 1]} : vector<2x256xf32> to vector<1x256xf32>
    %8 = vector.shape_cast %7 : vector<1x256xf32> to vector<1x256xf32>
    %9 = vector.broadcast %8 : vector<1x256xf32> to vector<16x256xf32>
    %10 = arith.select %6, %9, %4 : vector<16x256xi1>, vector<16x256xf32>
    %c1_i32_1 = arith.constant 1 : i32
    %11 = vector.broadcast %c1_i32_1 : i32 to vector<16x256xi32>
    %12 = arith.cmpi eq, %3, %11 : vector<16x256xi32>
    %13 = vector.extract_strided_slice %0 {offsets = [1, 0], sizes = [1, 256], strides = [1, 1]} : vector<2x256xf32> to vector<1x256xf32>
    %14 = vector.shape_cast %13 : vector<1x256xf32> to vector<1x256xf32>
    %15 = vector.broadcast %14 : vector<1x256xf32> to vector<16x256xf32>
    %16 = arith.select %12, %15, %10 : vector<16x256xi1>, vector<16x256xf32>
    %c0_2 = arith.constant 0 : index
    %c0_3 = arith.constant 0 : index
    %17 = vector.load %arg1[%c0_2, %c0_3] : memref<16x128xf32, #tpu.memory_space<vmem>>, vector<16x128xf32>
    %c0_4 = arith.constant 0 : index
    %c0_5 = arith.constant 0 : index
    %18 = vector.load %arg2[%c0_4, %c0_5] : memref<256x128xbf16, #tpu.memory_space<vmem>>, vector<256x128xbf16>
    %c0_6 = arith.constant 0 : index
    %c0_7 = arith.constant 0 : index
    %19 = vector.load %arg3[%c0_6, %c0_7] : memref<1x256xf32, #tpu.memory_space<vmem>>, vector<1x256xf32>
    %c0_8 = arith.constant 0 : index
    %c0_9 = arith.constant 0 : index
    %20 = vector.load %arg4[%c0_8, %c0_9] : memref<128x256xbf16, #tpu.memory_space<vmem>>, vector<128x256xbf16>
    %c0_10 = arith.constant 0 : index
    %c0_11 = arith.constant 0 : index
    %21 = vector.load %arg5[%c0_10, %c0_11] : memref<1x128xf32, #tpu.memory_space<vmem>>, vector<1x128xf32>
    %22 = arith.truncf %17 : vector<16x128xf32> to vector<16x128xbf16>
    %cst_12 = arith.constant dense<0.000000e+00> : vector<16x256xf32>
    %23 = tpu.matmul %22, %18, %cst_12 {dimension_numbers = #tpu.dot_dimension_numbers<[1], [1], [0], [0], [0, 0, 1, 0], [], []>} : vector<16x128xbf16>, vector<256x128xbf16>, vector<16x256xf32> -> vector<16x256xf32>
    %24 = vector.broadcast %19 : vector<1x256xf32> to vector<16x256xf32>
    %25 = arith.addf %23, %24 : vector<16x256xf32>
    %cst_13 = arith.constant 0.000000e+00 : f32
    %26 = vector.broadcast %cst_13 : f32 to vector<16x256xf32>
    %27 = arith.maximumf %25, %26 : vector<16x256xf32>
    %28 = arith.mulf %27, %16 : vector<16x256xf32>
    %29 = arith.truncf %28 : vector<16x256xf32> to vector<16x256xbf16>
    %cst_14 = arith.constant dense<0.000000e+00> : vector<16x128xf32>
    %30 = tpu.matmul %29, %20, %cst_14 {dimension_numbers = #tpu.dot_dimension_numbers<[1], [1], [0], [0], [0, 0, 1, 0], [], []>} : vector<16x256xbf16>, vector<128x256xbf16>, vector<16x128xf32> -> vector<16x128xf32>
    %31 = vector.broadcast %21 : vector<1x128xf32> to vector<16x128xf32>
    %32 = arith.addf %30, %31 : vector<16x128xf32>
    %c0_15 = arith.constant 0 : index
    %c0_16 = arith.constant 0 : index
    %33 = vector.load %arg7[%c0_15, %c0_16] : memref<16x128xf32, #tpu.memory_space<vmem>>, vector<16x128xf32>
    tpu.vector_store %arg7[%c0_15, %c0_16], %32 {strides = array<i32>} : memref<16x128xf32, #tpu.memory_space<vmem>>, vector<16x128xf32>,
    return
  }
  func.func @transform_0(%arg0: i32) -> (i32, i32) {
    %c0_i32 = arith.constant 0 : i32
    %c0_i32_0 = arith.constant 0 : i32
    return %arg0, %c0_i32 : i32, i32
  }
  func.func @transform_1(%arg0: i32) -> (i32, i32) {
    %c0_i32 = arith.constant 0 : i32
    %c0_i32_0 = arith.constant 0 : i32
    %c0_i32_1 = arith.constant 0 : i32
    return %c0_i32, %c0_i32_0 : i32, i32
  }
  func.func @transform_2(%arg0: i32) -> (i32, i32) {
    %c0_i32 = arith.constant 0 : i32
    %c0_i32_0 = arith.constant 0 : i32
    %c0_i32_1 = arith.constant 0 : i32
    return %c0_i32, %c0_i32_0 : i32, i32
  }
  func.func @transform_3(%arg0: i32) -> (i32, i32) {
    %c0_i32 = arith.constant 0 : i32
    %c0_i32_0 = arith.constant 0 : i32
    %c0_i32_1 = arith.constant 0 : i32
    return %c0_i32, %c0_i32_0 : i32, i32
  }
  func.func @transform_4(%arg0: i32) -> (i32, i32) {
    %c0_i32 = arith.constant 0 : i32
    %c0_i32_0 = arith.constant 0 : i32
    %c0_i32_1 = arith.constant 0 : i32
    return %c0_i32, %c0_i32_0 : i32, i32
  }
  func.func @transform_5(%arg0: i32) -> (i32, i32) {
    %c0_i32 = arith.constant 0 : i32
    %c0_i32_0 = arith.constant 0 : i32
    %c0_i32_1 = arith.constant 0 : i32
    return %c0_i32, %c0_i32_0 : i32, i32
  }
  func.func @transform_6(%arg0: i32) -> (i32, i32) {
    %c0_i32 = arith.constant 0 : i32
    %c0_i32_0 = arith.constant 0 : i32
    return %arg0, %c0_i32 : i32, i32
  }
}

</mosaic_0001>

<bundles_post_ra>
// kernel: tpu_custom_call.1
= control target key start
LH: loop header
LB: loop body
LE: loop exit
PB: predicated region body
PF: predicated region fallthrough
CT: control target
= control target key end

     0   :  { %11 = vsyncpa [#allocation3], 0  ;;  %s869_s0 = inlined_call_operand.hbm [shape: f32[16,128], index: 0, kind: input, shape index: {}]   ;;  %s870_s1 = inlined_call_operand.hbm [shape: bf16[256,128], index: 1, kind: input, shape index: {}]   ;;  %s871_s2 = inlined_call_operand.hbm [shape: f32[1,256], index: 2, kind: input, shape index: {}]   ;;  %s872_s3 = inlined_call_operand.hbm [shape: bf16[128,256], index: 3, kind: input, shape index: {}]   ;;  %s873_s4 = inlined_call_operand.hbm [shape: f32[1,128], index: 4, kind: input, shape index: {}]   ;;  %s874_s5 = inlined_call_operand.vmem [shape: f32[2,256], index: 5, kind: input, shape index: {}]   ;;  %s875_s6 = inlined_call_operand.hbm [shape: f32[16,128], index: 6, kind: output, shape index: {}]  }
   0x1   :  { %12 = vsyncpa [#allocation6], 0 }
   0x2   :  { %13 = vsyncpa [#allocation9], 0  ;;  %s32_s23 = sshll.u32 %s870_s1, 4  ;;  %s33_s23 = int_to_ptr.hbm [resolvable:$true] %s32_s23 }
   0x3   :  { %14 = vsyncpa [#allocation4], 0  ;;  %s778_s24 = smov [#allocation5]   ;;  %s779_s26 = smov 64  }
   0x4   :  { %s34_s25 = sshll.u32 %s778_s24, 4  ;;  %s780_s27 = smov 4   ;;  %s35_s25 = int_to_ptr.vmem [resolvable:$true] %s34_s25 }
   0x5   :  { %40 = dma.hbm_to_vmem [thread:$0]  %s33_s23, 2048, %s35_s25, [#allocation6], %s779_s26, %s779_s26, %s780_s27  }
   0x6   :  { %s56_s30 = sshll.u32 %s872_s3, 4  ;;  %s781_s7 = smov [#allocation8]   ;;  %s57_s30 = int_to_ptr.hbm [resolvable:$true] %s56_s30 }
   0x7   :  { %s58_s8 = sshll.u32 %s781_s7, 4  ;;  %s19_s11 = sshll.u32 %s869_s0, 4  ;;  %s59_s8 = int_to_ptr.vmem [resolvable:$true] %s58_s8  ;;  %s20_s11 = int_to_ptr.hbm [resolvable:$true] %s19_s11 }
   0x8   :  { %s782_s1 = smov 128   ;;  %s783_s12 = smov 8  }
   0x9   :  { %64 = dma.hbm_to_vmem [thread:$0]  %s57_s30, 2048, %s59_s8, [#allocation9], %s782_s1, %s782_s1, %s783_s12  }
   0xa   :  { %s46_s15 = sshll.u32 %s871_s2, 4  ;;  %s784_s3 = smov [#allocation2]   ;;  %s47_s15 = int_to_ptr.hbm [resolvable:$true] %s46_s15 }
   0xb   :  { %s21_s16 = sshll.u32 %s784_s3, 4  ;;  %s785_s0 = smov [#allocation7]   ;;  %s22_s16 = int_to_ptr.vmem [resolvable:$true] %s21_s16 }
   0xc   :  { %27 = dma.hbm_to_vmem [thread:$0]  %s20_s11, 256, %s22_s16, [#allocation3], %s782_s1, %s782_s1, %s783_s12  }
   0xd   :  { %s48_s17 = sshll.u32 %s785_s0, 4  ;;  %s70_s20 = sshll.u32 %s873_s4, 4  ;;  %s49_s17 = int_to_ptr.vmem [resolvable:$true] %s48_s17  ;;  %s71_s20 = int_to_ptr.hbm [resolvable:$true] %s70_s20 }
   0xe   :  { %51 = dma.hbm_to_vmem [thread:$0]  %s47_s15, 32, %s49_s17, [#allocation6]  }
   0xf   :  { %s786_s21 = smov [#allocation10]  }
  0x10   :  { %s72_s22 = sshll.u32 %s786_s21, 4  ;;  %s73_s22 = int_to_ptr.vmem [resolvable:$true] %s72_s22 }
  0x11   :  { %75 = dma.hbm_to_vmem [thread:$0]  %s71_s20, 16, %s73_s22, [#allocation9]  }
  0x12   :  { %770 = dma.done.wait [#allocation3], 256  }
  0x13   :  { %771 = vsyncadd [#allocation3], 4294967040 }
  0x14   :  { %772 = dma.done.wait [#allocation6], 2080  }
  0x15   :  { %773 = vsyncadd [#allocation6], 4294965216 }
  0x16   :  { %774 = dma.done.wait [#allocation9], 2064  }
  0x17   :  { %775 = vsyncadd [#allocation9], 4294965232  ;;  %v590_v0 = vld [vmem:[#allocation5 + $0x38] sm:$0xff]  ;;  %v589_v2 = vld [vmem:[#allocation5 + $0x30] sm:$0xff]  ;;  %s440_s26 = sshll.u32 %s875_s6, 4  ;;  %s441_s26 = int_to_ptr.hbm [resolvable:$true] %s440_s26 }
  0x18   :  { %v598_v1 = vld [vmem:[#allocation5 + $0x78] sm:$0xff]  ;;  %283 = vmatpush.bf16.xpose.msra.mxu0 %v590_v0  ;;  %v597_v3 = vld [vmem:[#allocation5 + $0x70] sm:$0xff]  ;;  %v588_v4 = vld [vmem:[#allocation5 + $0x28] sm:$0xff] }
  0x19   :  { %297 = vmatpush.bf16.xpose.msra.mxu1 %v598_v1  ;;  %v596_v5 = vld [vmem:[#allocation5 + $0x68] sm:$0xff]  ;;  %v587_v6 = vld [vmem:[#allocation5 + $0x20] sm:$0xff]  ;;  %v586_v8 = vld [vmem:[#allocation5 + $0x18] sm:$0xff] }
  0x1a   :  { %v595_v7 = vld [vmem:[#allocation5 + $0x60] sm:$0xff]  ;;  %v594_v9 = vld [vmem:[#allocation5 + $0x58] sm:$0xff]  ;;  %v577_v10 = vld [vmem:[#allocation8 + $0x70] sm:$0xf] }
  0x1b   :  { %v614_v11 = vld [vmem:[#allocation8 + $0x74] sm:$0xf0]  ;;  %v613_v12 = vld [vmem:[#allocation8 + $0x74] sm:$0xf]  ;;  %v579_v14 = vld [vmem:[#allocation8 + $0x78] sm:$0xf0] }
  0x1c   :  { %v578_v13 = vor.u32 %v614_v11, %v577_v10  ;;  %v582_v15 = vor.u32 %v613_v12, %v579_v14  ;;  %v585_v16 = vld [vmem:[#allocation5 + $0x10] sm:$0xff]  ;;  %v569_v17 = vld [vmem:[#allocation8 + $0x60] sm:$0xf]  ;;  %v612_v18 = vld [vmem:[#allocation8 + $0x64] sm:$0xf0] }
  0x1d   :  { %v593_v19 = vld [vmem:[#allocation5 + $0x50] sm:$0xff]  ;;  %v611_v20 = vld [vmem:[#allocation8 + $0x64] sm:$0xf]  ;;  %v570_v22 = vor.u32 %v612_v18, %v569_v17  ;;  %v610_v26 = vld [vmem:[#allocation8 + $0x54] sm:$0xf0] }
  0x1e   :  { %404 = vmatpush.bf16.xpose.msra.mxu2 %v578_v13  ;;  %418 = vmatpush.bf16.xpose.msra.mxu3 %v582_v15  ;;  %v571_v21 = vld [vmem:[#allocation8 + $0x68] sm:$0xf0]  ;;  %v561_v25 = vld [vmem:[#allocation8 + $0x50] sm:$0xf]  ;;  %v609_v28 = vld [vmem:[#allocation8 + $0x54] sm:$0xf] }
  0x1f   :  { %v574_v23 = vor.u32 %v611_v20, %v571_v21  ;;  %v584_v24 = vld [vmem:[#allocation5 + $0x8] sm:$0xff]  ;;  %v563_v29 = vld [vmem:[#allocation8 + $0x58] sm:$0xf0]  ;;  %v562_v30 = vor.u32 %v610_v26, %v561_v25  ;;  %v553_v33 = vld [vmem:[#allocation8 + $0x40] sm:$0xf] }
  0x20   :  { %284 = vmatpush.bf16.xpose.msra.mxu0 %v589_v2  ;;  %v592_v27 = vld [vmem:[#allocation5 + $0x48] sm:$0xff]  ;;  %v566_v31 = vor.u32 %v609_v28, %v563_v29  ;;  %v583_v32 = vld [vmem:[#allocation5] sm:$0xff]  ;;  %v129_v40 = vld [vmem:[#allocation2] sm:$0xff] }
  0x21   :  { %298 = vmatpush.bf16.xpose.msra.mxu1 %v597_v3  ;;  %v608_v34 = vld [vmem:[#allocation8 + $0x44] sm:$0xf0]  ;;  %v591_v35 = vld [vmem:[#allocation5 + $0x40] sm:$0xff]  ;;  %v555_v37 = vld [vmem:[#allocation8 + $0x48] sm:$0xf0]  ;;  %v99_v3 = vlaneseq }
  0x22   :  { %v607_v36 = vld [vmem:[#allocation8 + $0x44] sm:$0xf]  ;;  %v554_v38 = vor.u32 %v608_v34, %v553_v33  ;;  %v130_v41 = vld [vmem:[#allocation2 + $0x8] sm:$0xff]  ;;  %v545_v43 = vld [vmem:[#allocation8 + $0x30] sm:$0xf] }
  0x23   :  { %v558_v39 = vor.u32 %v607_v36, %v555_v37  ;;  %v181_v42 = vpack.c.bf16 %v130_v41, %v129_v40  ;;  %v606_v44 = vld [vmem:[#allocation8 + $0x34] sm:$0xf0]  ;;  %v605_v45 = vld [vmem:[#allocation8 + $0x34] sm:$0xf]  ;;  %v547_v46 = vld [vmem:[#allocation8 + $0x38] sm:$0xf0] }
  0x24   :  { %v546_v47 = vor.u32 %v606_v44, %v545_v43  ;;  %v550_v48 = vor.u32 %v605_v45, %v547_v46  ;;  %v537_v49 = vld [vmem:[#allocation8 + $0x20] sm:$0xf]  ;;  %v604_v50 = vld [vmem:[#allocation8 + $0x24] sm:$0xf0]  ;;  %v603_v51 = vld [vmem:[#allocation8 + $0x24] sm:$0xf] }
  0x25   :  { %v539_v52 = vld [vmem:[#allocation8 + $0x28] sm:$0xf0]  ;;  %v538_v53 = vor.u32 %v604_v50, %v537_v49  ;;  %v529_v55 = vld [vmem:[#allocation8 + $0x10] sm:$0xf]  ;;  %v602_v56 = vld [vmem:[#allocation8 + $0x14] sm:$0xf0] }
  0x26   :  { %405 = vmatpush.bf16.xpose.msra.mxu2 %v570_v22  ;;  %419 = vmatpush.bf16.xpose.msra.mxu3 %v574_v23  ;;  %v542_v54 = vor.u32 %v603_v51, %v539_v52  ;;  %v601_v57 = vld [vmem:[#allocation8 + $0x14] sm:$0xf]  ;;  %v530_v58 = vor.u32 %v602_v56, %v529_v55  ;;  %v531_v59 = vld [vmem:[#allocation8 + $0x18] sm:$0xf0]  ;;  %v521_v61 = vld [vmem:[#allocation8] sm:$0xf] }
  0x27   :  { %v534_v60 = vor.u32 %v601_v57, %v531_v59  ;;  %v600_v62 = vld [vmem:[#allocation8 + $0x4] sm:$0xf0]  ;;  %v599_v0 = vld [vmem:[#allocation8 + $0x4] sm:$0xf]  ;;  %v523_v1 = vld [vmem:[#allocation8 + $0x8] sm:$0xf0] }
  0x28   :  { %285 = vmatpush.bf16.xpose.msra.mxu0 %v588_v4  ;;  %v522_v63 = vor.u32 %v600_v62, %v521_v61  ;;  %v526_v2 = vor.u32 %v599_v0, %v523_v1  ;;  %v100_v4 = vshrl.u32 %v99_v3, 7 }
  0x29   :  { %299 = vmatpush.bf16.xpose.msra.mxu1 %v596_v5  ;;  %v98_v5 = vld [vmem:[%s874_s5] sm:$0xf]  ;;  %s787_s5 = smov [#allocation11]  }
  0x2a   :  { %v108_v10 = vperm.slane %v98_v5, 2  ;;  %v119_v17 = vperm.slane %v98_v5, 1  ;;  %v120_v18 = vperm.slane %v98_v5, 3  ;;  %s438_s23 = sshll.u32 %s787_s5, 4  ;;  %s439_s23 = int_to_ptr.vmem [resolvable:$true] %s438_s23 }
  0x2c   :  { %v112_v20 = vperm.slane %v108_v10, 0  ;;  %v123_v25 = vperm.slane %v119_v17, 1  ;;  %v124_v26 = vperm.slane %v120_v18, 1 }
  0x2e   :  { %406 = vmatpush.bf16.xpose.msra.mxu2 %v562_v30  ;;  %420 = vmatpush.bf16.xpose.msra.mxu3 %v566_v31 }
  0x30   :  { %286 = vmatpush.bf16.xpose.msra.mxu0 %v587_v6  ;;  %v101_v6 = vadd.s32 8, %v100_v4 }
  0x31   :  { %300 = vmatpush.bf16.xpose.msra.mxu1 %v595_v7  ;;  %v107_v7 = vperm.slane %v98_v5, 0 }
  0x32   :  { %v103_v13 = vand.u32 1, %v101_v6 }
  0x34   :  { %vm851_vm1 = vcmp.eq.s32.totalorder %v103_v13, 0  ;;  %vm118_vm3 = vcmp.eq.s32.totalorder %v103_v13, 1 }
  0x35   :  { %v116_v29 = vsel %vm851_vm1, %v112_v20, 0.0 }
  0x36   :  { %407 = vmatpush.bf16.xpose.msra.mxu2 %v554_v38  ;;  %421 = vmatpush.bf16.xpose.msra.mxu3 %v558_v39  ;;  %v128_v39 = vsel %vm118_vm3, %v124_v26, %v116_v29 }
  0x38   :  { %287 = vmatpush.bf16.xpose.msra.mxu0 %v586_v8  ;;  %v163_v8 = vld [vmem:[#allocation7] sm:$0x3] }
  0x39   :  { %301 = vmatpush.bf16.xpose.msra.mxu1 %v594_v9  ;;  %v102_v9 = vand.u32 1, %v100_v4  ;;  %v183_v14 = vperm.slane %v163_v8, 0  ;;  %v184_v15 = vperm.slane %v163_v8, 1 }
  0x3b   :  { %vm847_vm0 = vcmp.eq.s32.totalorder %v102_v9, 0  ;;  %vm117_vm2 = vcmp.eq.s32.totalorder %v102_v9, 1 }
  0x3e   :  { %408 = vmatpush.bf16.xpose.msra.mxu2 %v546_v47  ;;  %422 = vmatpush.bf16.xpose.msra.mxu3 %v550_v48  ;;  %v625_v48 = vld [vmem:[#allocation10] ss:$0 sm:$0xff] }
  0x40   :  { %288 = vmatpush.bf16.xpose.msra.mxu0 %v585_v16  ;;  %v111_v16 = vperm.slane %v107_v7, 0 }
  0x41   :  { %302 = vmatpush.bf16.xpose.msra.mxu1 %v593_v19 }
  0x42   :  { %v115_v28 = vsel %vm851_vm1, %v111_v16, 0.0 }
  0x43   :  { %v127_v38 = vsel %vm118_vm3, %v123_v25, %v115_v28 }
  0x46   :  { %409 = vmatpush.bf16.xpose.msra.mxu2 %v538_v53  ;;  %423 = vmatpush.bf16.xpose.msra.mxu3 %v542_v54 }
  0x48   :  { %289 = vmatpush.bf16.xpose.msra.mxu0 %v584_v24  ;;  %v113_v24 = vsel %vm847_vm0, %v111_v16, 0.0 }
  0x49   :  { %303 = vmatpush.bf16.xpose.msra.mxu1 %v592_v27  ;;  %v114_v27 = vsel %vm847_vm0, %v112_v20, 0.0  ;;  %v125_v36 = vsel %vm117_vm2, %v123_v25, %v113_v24 }
  0x4a   :  { %v126_v37 = vsel %vm117_vm2, %v124_v26, %v114_v27 }
  0x4e   :  { %410 = vmatpush.bf16.xpose.msra.mxu2 %v530_v58  ;;  %424 = vmatpush.bf16.xpose.msra.mxu3 %v534_v60 }
  0x50   :  { %290 = vmatpush.bf16.xpose.msra.mxu0 %v583_v32 }
  0x51   :  { %304 = vmatpush.bf16.xpose.msra.mxu1 %v591_v35 }
  0x56   :  { %411 = vmatpush.bf16.xpose.msra.mxu2 %v522_v63  ;;  %425 = vmatpush.bf16.xpose.msra.mxu3 %v526_v2 }
  0x57   :  { %291 = vmatmul.bf16.vlgmr.msra.gmra.mxu0 %v181_v42 }
  0x58   :  { %305 = vmatmul.bf16.vlgmr.msra.gmra.mxu1 %v181_v42 }
  0xd4   :  { %v292_v11 = vpop.f32.mrf.mxu0 }
  0xd5   :  { %v306_v12 = vpop.f32.mrf.mxu1  ;;  %v293_v22 = vadd.f32 %v292_v11, %v183_v14 }
  0xd6   :  { %v307_v23 = vadd.f32 %v306_v12, %v184_v15 }
  0xd7   :  { %v311_v32 = vmax.f32 %v293_v22, 0.0 }
  0xd8   :  { %v312_v33 = vmax.f32 %v307_v23, 0.0 }
  0xd9   :  { %v315_v42 = vmul.f32 %v311_v32, %v125_v36 }
  0xda   :  { %v316_v43 = vmul.f32 %v312_v33, %v126_v37 }
  0xdc   :  { %v294_v30 = vpop.f32.mrf.mxu0 }
  0xdd   :  { %v308_v31 = vpop.f32.mrf.mxu1  ;;  %v295_v34 = vadd.f32 %v294_v30, %v183_v14 }
  0xde   :  { %v309_v35 = vadd.f32 %v308_v31, %v184_v15 }
  0xdf   :  { %v313_v40 = vmax.f32 %v295_v34, 0.0 }
  0xe0   :  { %v314_v41 = vmax.f32 %v309_v35, 0.0 }
  0xe1   :  { %v317_v44 = vmul.f32 %v313_v40, %v127_v38 }
  0xe2   :  { %v318_v45 = vmul.f32 %v314_v41, %v128_v39 }
  0xe3   :  { %v319_v46 = vpack.c.bf16 %v317_v44, %v315_v42 }
  0xe4   :  { %v320_v47 = vpack.c.bf16 %v318_v45, %v316_v43 }
  0xe5   :  { %412 = vmatmul.bf16.vlgmr.msra.gmra.mxu2 %v319_v46 }
  0xe6   :  { %426 = vmatmul.bf16.vlgmr.msra.gmra.mxu3 %v320_v47 }
 0x168   :  { %v413_v49 = vpop.f32.mrf.mxu2 }
 0x169   :  { %v427_v50 = vpop.f32.mrf.mxu3  ;;  %v414_v51 = vadd.f32 %v625_v48, %v413_v49 }
 0x16b   :  { %v428_v52 = vadd.f32 %v427_v50, %v414_v51 }
 0x16d   :  { %432 = vst [vmem:[#allocation11] sm:$0xff] %v428_v52 }
 0x170   :  { %v415_v53 = vpop.f32.mrf.mxu2 }
 0x171   :  { %v416_v54 = vadd.f32 %v625_v48, %v415_v53  ;;  %v429_v55 = vpop.f32.mrf.mxu3 }
 0x173   :  { %v430_v56 = vadd.f32 %v429_v55, %v416_v54 }
 0x175   :  { %433 = vst [vmem:[#allocation11 + $0x8] sm:$0xff] %v430_v56 }
 0x176   :  { %446 = dma.vmem_to_hbm [thread:$0]  %s439_s23, 256, %s441_s26, [#allocation4], %s782_s1, %s782_s1, %s783_s12  }
 0x177   :  { %776 = dma.done.wait [#allocation4], 256  }
 0x178   :  { %777 = vsyncadd [#allocation4], 4294967040 }
 0x179   :  { %451 = vsyncpa [#allocation3], 1 }
 0x17a   :  { %452 = vsyncpa [#allocation6], 1 }
 0x17b   :  { %453 = vsyncpa [#allocation9], 1 }
 0x17c   :  { %454 = vsyncpa [#allocation4], 1 }

// kernel: tpu_custom_call.1
= control target key start
LH: loop header
LB: loop body
LE: loop exit
PB: predicated region body
PF: predicated region fallthrough
CT: control target
= control target key end

     0   :  { %11 = vsyncpa [#allocation3], 0  ;;  %s869_s0 = inlined_call_operand.hbm [shape: f32[16,128], index: 0, kind: input, shape index: {}]   ;;  %s870_s1 = inlined_call_operand.hbm [shape: bf16[256,128], index: 1, kind: input, shape index: {}]   ;;  %s871_s2 = inlined_call_operand.hbm [shape: f32[1,256], index: 2, kind: input, shape index: {}]   ;;  %s872_s3 = inlined_call_operand.hbm [shape: bf16[128,256], index: 3, kind: input, shape index: {}]   ;;  %s873_s4 = inlined_call_operand.hbm [shape: f32[1,128], index: 4, kind: input, shape index: {}]   ;;  %s874_s5 = inlined_call_operand.vmem [shape: f32[2,256], index: 5, kind: input, shape index: {}]   ;;  %s875_s6 = inlined_call_operand.hbm [shape: f32[16,128], index: 6, kind: output, shape index: {}]  }
   0x1   :  { %12 = vsyncpa [#allocation6], 0 }
   0x2   :  { %13 = vsyncpa [#allocation9], 0  ;;  %s32_s23 = sshll.u32 %s870_s1, 4  ;;  %s33_s23 = int_to_ptr.hbm [resolvable:$true] %s32_s23 }
   0x3   :  { %14 = vsyncpa [#allocation4], 0  ;;  %s778_s24 = smov [#allocation5]   ;;  %s779_s26 = smov 64  }
   0x4   :  { %s34_s25 = sshll.u32 %s778_s24, 4  ;;  %s780_s27 = smov 4   ;;  %s35_s25 = int_to_ptr.vmem [resolvable:$true] %s34_s25 }
   0x5   :  { %40 = dma.hbm_to_vmem [thread:$0]  %s33_s23, 2048, %s35_s25, [#allocation6], %s779_s26, %s779_s26, %s780_s27  }
   0x6   :  { %s56_s30 = sshll.u32 %s872_s3, 4  ;;  %s781_s7 = smov [#allocation8]   ;;  %s57_s30 = int_to_ptr.hbm [resolvable:$true] %s56_s30 }
   0x7   :  { %s58_s8 = sshll.u32 %s781_s7, 4  ;;  %s19_s11 = sshll.u32 %s869_s0, 4  ;;  %s59_s8 = int_to_ptr.vmem [resolvable:$true] %s58_s8  ;;  %s20_s11 = int_to_ptr.hbm [resolvable:$true] %s19_s11 }
   0x8   :  { %s782_s1 = smov 128   ;;  %s783_s12 = smov 8  }
   0x9   :  { %64 = dma.hbm_to_vmem [thread:$0]  %s57_s30, 2048, %s59_s8, [#allocation9], %s782_s1, %s782_s1, %s783_s12  }
   0xa   :  { %s46_s15 = sshll.u32 %s871_s2, 4  ;;  %s784_s3 = smov [#allocation2]   ;;  %s47_s15 = int_to_ptr.hbm [resolvable:$true] %s46_s15 }
   0xb   :  { %s21_s16 = sshll.u32 %s784_s3, 4  ;;  %s785_s0 = smov [#allocation7]   ;;  %s22_s16 = int_to_ptr.vmem [resolvable:$true] %s21_s16 }
   0xc   :  { %27 = dma.hbm_to_vmem [thread:$0]  %s20_s11, 256, %s22_s16, [#allocation3], %s782_s1, %s782_s1, %s783_s12  }
   0xd   :  { %s48_s17 = sshll.u32 %s785_s0, 4  ;;  %s70_s20 = sshll.u32 %s873_s4, 4  ;;  %s49_s17 = int_to_ptr.vmem [resolvable:$true] %s48_s17  ;;  %s71_s20 = int_to_ptr.hbm [resolvable:$true] %s70_s20 }
   0xe   :  { %51 = dma.hbm_to_vmem [thread:$0]  %s47_s15, 32, %s49_s17, [#allocation6]  }
   0xf   :  { %s786_s21 = smov [#allocation10]  }
  0x10   :  { %s72_s22 = sshll.u32 %s786_s21, 4  ;;  %s73_s22 = int_to_ptr.vmem [resolvable:$true] %s72_s22 }
  0x11   :  { %75 = dma.hbm_to_vmem [thread:$0]  %s71_s20, 16, %s73_s22, [#allocation9]  }
  0x12   :  { %770 = dma.done.wait [#allocation3], 256  }
  0x13   :  { %771 = vsyncadd [#allocation3], 4294967040 }
  0x14   :  { %772 = dma.done.wait [#allocation6], 2080  }
  0x15   :  { %773 = vsyncadd [#allocation6], 4294965216 }
  0x16   :  { %774 = dma.done.wait [#allocation9], 2064  }
  0x17   :  { %775 = vsyncadd [#allocation9], 4294965232  ;;  %v590_v0 = vld [vmem:[#allocation5 + $0x38] sm:$0xff]  ;;  %v589_v2 = vld [vmem:[#allocation5 + $0x30] sm:$0xff]  ;;  %s440_s26 = sshll.u32 %s875_s6, 4  ;;  %s441_s26 = int_to_ptr.hbm [resolvable:$true] %s440_s26 }
  0x18   :  { %v598_v1 = vld [vmem:[#allocation5 + $0x78] sm:$0xff]  ;;  %283 = vmatpush.bf16.xpose.msra.mxu0 %v590_v0  ;;  %v597_v3 = vld [vmem:[#allocation5 + $0x70] sm:$0xff]  ;;  %v588_v4 = vld [vmem:[#allocation5 + $0x28] sm:$0xff] }
  0x19   :  { %297 = vmatpush.bf16.xpose.msra.mxu1 %v598_v1  ;;  %v596_v5 = vld [vmem:[#allocation5 + $0x68] sm:$0xff]  ;;  %v587_v6 = vld [vmem:[#allocation5 + $0x20] sm:$0xff]  ;;  %v586_v8 = vld [vmem:[#allocation5 + $0x18] sm:$0xff] }
  0x1a   :  { %v595_v7 = vld [vmem:[#allocation5 + $0x60] sm:$0xff]  ;;  %v594_v9 = vld [vmem:[#allocation5 + $0x58] sm:$0xff]  ;;  %v577_v10 = vld [vmem:[#allocation8 + $0x70] sm:$0xf] }
  0x1b   :  { %v614_v11 = vld [vmem:[#allocation8 + $0x74] sm:$0xf0]  ;;  %v613_v12 = vld [vmem:[#allocation8 + $0x74] sm:$0xf]  ;;  %v579_v14 = vld [vmem:[#allocation8 + $0x78] sm:$0xf0] }
  0x1c   :  { %v578_v13 = vor.u32 %v614_v11, %v577_v10  ;;  %v582_v15 = vor.u32 %v613_v12, %v579_v14  ;;  %v585_v16 = vld [vmem:[#allocation5 + $0x10] sm:$0xff]  ;;  %v569_v17 = vld [vmem:[#allocation8 + $0x60] sm:$0xf]  ;;  %v612_v18 = vld [vmem:[#allocation8 + $0x64] sm:$0xf0] }
  0x1d   :  { %v593_v19 = vld [vmem:[#allocation5 + $0x50] sm:$0xff]  ;;  %v611_v20 = vld [vmem:[#allocation8 + $0x64] sm:$0xf]  ;;  %v570_v22 = vor.u32 %v612_v18, %v569_v17  ;;  %v610_v26 = vld [vmem:[#allocation8 + $0x54] sm:$0xf0] }
  0x1e   :  { %404 = vmatpush.bf16.xpose.msra.mxu2 %v578_v13  ;;  %418 = vmatpush.bf16.xpose.msra.mxu3 %v582_v15  ;;  %v571_v21 = vld [vmem:[#allocation8 + $0x68] sm:$0xf0]  ;;  %v561_v25 = vld [vmem:[#allocation8 + $0x50] sm:$0xf]  ;;  %v609_v28 = vld [vmem:[#allocation8 + $0x54] sm:$0xf] }
  0x1f   :  { %v574_v23 = vor.u32 %v611_v20, %v571_v21  ;;  %v584_v24 = vld [vmem:[#allocation5 + $0x8] sm:$0xff]  ;;  %v563_v29 = vld [vmem:[#allocation8 + $0x58] sm:$0xf0]  ;;  %v562_v30 = vor.u32 %v610_v26, %v561_v25  ;;  %v553_v33 = vld [vmem:[#allocation8 + $0x40] sm:$0xf] }
  0x20   :  { %284 = vmatpush.bf16.xpose.msra.mxu0 %v589_v2  ;;  %v592_v27 = vld [vmem:[#allocation5 + $0x48] sm:$0xff]  ;;  %v566_v31 = vor.u32 %v609_v28, %v563_v29  ;;  %v583_v32 = vld [vmem:[#allocation5] sm:$0xff]  ;;  %v129_v40 = vld [vmem:[#allocation2] sm:$0xff] }
  0x21   :  { %298 = vmatpush.bf16.xpose.msra.mxu1 %v597_v3  ;;  %v608_v34 = vld [vmem:[#allocation8 + $0x44] sm:$0xf0]  ;;  %v591_v35 = vld [vmem:[#allocation5 + $0x40] sm:$0xff]  ;;  %v555_v37 = vld [vmem:[#allocation8 + $0x48] sm:$0xf0]  ;;  %v99_v3 = vlaneseq }
  0x22   :  { %v607_v36 = vld [vmem:[#allocation8 + $0x44] sm:$0xf]  ;;  %v554_v38 = vor.u32 %v608_v34, %v553_v33  ;;  %v130_v41 = vld [vmem:[#allocation2 + $0x8] sm:$0xff]  ;;  %v545_v43 = vld [vmem:[#allocation8 + $0x30] sm:$0xf] }
  0x23   :  { %v558_v39 = vor.u32 %v607_v36, %v555_v37  ;;  %v181_v42 = vpack.c.bf16 %v130_v41, %v129_v40  ;;  %v606_v44 = vld [vmem:[#allocation8 + $0x34] sm:$0xf0]  ;;  %v605_v45 = vld [vmem:[#allocation8 + $0x34] sm:$0xf]  ;;  %v547_v46 = vld [vmem:[#allocation8 + $0x38] sm:$0xf0] }
  0x24   :  { %v546_v47 = vor.u32 %v606_v44, %v545_v43  ;;  %v550_v48 = vor.u32 %v605_v45, %v547_v46  ;;  %v537_v49 = vld [vmem:[#allocation8 + $0x20] sm:$0xf]  ;;  %v604_v50 = vld [vmem:[#allocation8 + $0x24] sm:$0xf0]  ;;  %v603_v51 = vld [vmem:[#allocation8 + $0x24] sm:$0xf] }
  0x25   :  { %v539_v52 = vld [vmem:[#allocation8 + $0x28] sm:$0xf0]  ;;  %v538_v53 = vor.u32 %v604_v50, %v537_v49  ;;  %v529_v55 = vld [vmem:[#allocation8 + $0x10] sm:$0xf]  ;;  %v602_v56 = vld [vmem:[#allocation8 + $0x14] sm:$0xf0] }
  0x26   :  { %405 = vmatpush.bf16.xpose.msra.mxu2 %v570_v22  ;;  %419 = vmatpush.bf16.xpose.msra.mxu3 %v574_v23  ;;  %v542_v54 = vor.u32 %v603_v51, %v539_v52  ;;  %v601_v57 = vld [vmem:[#allocation8 + $0x14] sm:$0xf]  ;;  %v530_v58 = vor.u32 %v602_v56, %v529_v55  ;;  %v531_v59 = vld [vmem:[#allocation8 + $0x18] sm:$0xf0]  ;;  %v521_v61 = vld [vmem:[#allocation8] sm:$0xf] }
  0x27   :  { %v534_v60 = vor.u32 %v601_v57, %v531_v59  ;;  %v600_v62 = vld [vmem:[#allocation8 + $0x4] sm:$0xf0]  ;;  %v599_v0 = vld [vmem:[#allocation8 + $0x4] sm:$0xf]  ;;  %v523_v1 = vld [vmem:[#allocation8 + $0x8] sm:$0xf0] }
  0x28   :  { %285 = vmatpush.bf16.xpose.msra.mxu0 %v588_v4  ;;  %v522_v63 = vor.u32 %v600_v62, %v521_v61  ;;  %v526_v2 = vor.u32 %v599_v0, %v523_v1  ;;  %v100_v4 = vshrl.u32 %v99_v3, 7 }
  0x29   :  { %299 = vmatpush.bf16.xpose.msra.mxu1 %v596_v5  ;;  %v98_v5 = vld [vmem:[%s874_s5] sm:$0xf]  ;;  %s787_s5 = smov [#allocation11]  }
  0x2a   :  { %v108_v10 = vperm.slane %v98_v5, 2  ;;  %v119_v17 = vperm.slane %v98_v5, 1  ;;  %v120_v18 = vperm.slane %v98_v5, 3  ;;  %s438_s23 = sshll.u32 %s787_s5, 4  ;;  %s439_s23 = int_to_ptr.vmem [resolvable:$true] %s438_s23 }
  0x2c   :  { %v112_v20 = vperm.slane %v108_v10, 0  ;;  %v123_v25 = vperm.slane %v119_v17, 1  ;;  %v124_v26 = vperm.slane %v120_v18, 1 }
  0x2e   :  { %406 = vmatpush.bf16.xpose.msra.mxu2 %v562_v30  ;;  %420 = vmatpush.bf16.xpose.msra.mxu3 %v566_v31 }
  0x30   :  { %286 = vmatpush.bf16.xpose.msra.mxu0 %v587_v6  ;;  %v101_v6 = vadd.s32 8, %v100_v4 }
  0x31   :  { %300 = vmatpush.bf16.xpose.msra.mxu1 %v595_v7  ;;  %v107_v7 = vperm.slane %v98_v5, 0 }
  0x32   :  { %v103_v13 = vand.u32 1, %v101_v6 }
  0x34   :  { %vm851_vm1 = vcmp.eq.s32.totalorder %v103_v13, 0  ;;  %vm118_vm3 = vcmp.eq.s32.totalorder %v103_v13, 1 }
  0x35   :  { %v116_v29 = vsel %vm851_vm1, %v112_v20, 0.0 }
  0x36   :  { %407 = vmatpush.bf16.xpose.msra.mxu2 %v554_v38  ;;  %421 = vmatpush.bf16.xpose.msra.mxu3 %v558_v39  ;;  %v128_v39 = vsel %vm118_vm3, %v124_v26, %v116_v29 }
  0x38   :  { %287 = vmatpush.bf16.xpose.msra.mxu0 %v586_v8  ;;  %v163_v8 = vld [vmem:[#allocation7] sm:$0x3] }
  0x39   :  { %301 = vmatpush.bf16.xpose.msra.mxu1 %v594_v9  ;;  %v102_v9 = vand.u32 1, %v100_v4  ;;  %v183_v14 = vperm.slane %v163_v8, 0  ;;  %v184_v15 = vperm.slane %v163_v8, 1 }
  0x3b   :  { %vm847_vm0 = vcmp.eq.s32.totalorder %v102_v9, 0  ;;  %vm117_vm2 = vcmp.eq.s32.totalorder %v102_v9, 1 }
  0x3e   :  { %408 = vmatpush.bf16.xpose.msra.mxu2 %v546_v47  ;;  %422 = vmatpush.bf16.xpose.msra.mxu3 %v550_v48  ;;  %v625_v48 = vld [vmem:[#allocation10] ss:$0 sm:$0xff] }
  0x40   :  { %288 = vmatpush.bf16.xpose.msra.mxu0 %v585_v16  ;;  %v111_v16 = vperm.slane %v107_v7, 0 }
  0x41   :  { %302 = vmatpush.bf16.xpose.msra.mxu1 %v593_v19 }
  0x42   :  { %v115_v28 = vsel %vm851_vm1, %v111_v16, 0.0 }
  0x43   :  { %v127_v38 = vsel %vm118_vm3, %v123_v25, %v115_v28 }
  0x46   :  { %409 = vmatpush.bf16.xpose.msra.mxu2 %v538_v53  ;;  %423 = vmatpush.bf16.xpose.msra.mxu3 %v542_v54 }
  0x48   :  { %289 = vmatpush.bf16.xpose.msra.mxu0 %v584_v24  ;;  %v113_v24 = vsel %vm847_vm0, %v111_v16, 0.0 }
  0x49   :  { %303 = vmatpush.bf16.xpose.msra.mxu1 %v592_v27  ;;  %v114_v27 = vsel %vm847_vm0, %v112_v20, 0.0  ;;  %v125_v36 = vsel %vm117_vm2, %v123_v25, %v113_v24 }
  0x4a   :  { %v126_v37 = vsel %vm117_vm2, %v124_v26, %v114_v27 }
  0x4e   :  { %410 = vmatpush.bf16.xpose.msra.mxu2 %v530_v58  ;;  %424 = vmatpush.bf16.xpose.msra.mxu3 %v534_v60 }
  0x50   :  { %290 = vmatpush.bf16.xpose.msra.mxu0 %v583_v32 }
  0x51   :  { %304 = vmatpush.bf16.xpose.msra.mxu1 %v591_v35 }
  0x56   :  { %411 = vmatpush.bf16.xpose.msra.mxu2 %v522_v63  ;;  %425 = vmatpush.bf16.xpose.msra.mxu3 %v526_v2 }
  0x57   :  { %291 = vmatmul.bf16.vlgmr.msra.gmra.mxu0 %v181_v42 }
  0x58   :  { %305 = vmatmul.bf16.vlgmr.msra.gmra.mxu1 %v181_v42 }
  0xd4   :  { %v292_v11 = vpop.f32.mrf.mxu0 }
  0xd5   :  { %v306_v12 = vpop.f32.mrf.mxu1  ;;  %v293_v22 = vadd.f32 %v292_v11, %v183_v14 }
  0xd6   :  { %v307_v23 = vadd.f32 %v306_v12, %v184_v15 }
  0xd7   :  { %v311_v32 = vmax.f32 %v293_v22, 0.0 }
  0xd8   :  { %v312_v33 = vmax.f32 %v307_v23, 0.0 }
  0xd9   :  { %v315_v42 = vmul.f32 %v311_v32, %v125_v36 }
  0xda   :  { %v316_v43 = vmul.f32 %v312_v33, %v126_v37 }
  0xdc   :  { %v294_v30 = vpop.f32.mrf.mxu0 }
  0xdd   :  { %v308_v31 = vpop.f32.mrf.mxu1  ;;  %v295_v34 = vadd.f32 %v294_v30, %v183_v14 }
  0xde   :  { %v309_v35 = vadd.f32 %v308_v31, %v184_v15 }
  0xdf   :  { %v313_v40 = vmax.f32 %v295_v34, 0.0 }
  0xe0   :  { %v314_v41 = vmax.f32 %v309_v35, 0.0 }
  0xe1   :  { %v317_v44 = vmul.f32 %v313_v40, %v127_v38 }
  0xe2   :  { %v318_v45 = vmul.f32 %v314_v41, %v128_v39 }
  0xe3   :  { %v319_v46 = vpack.c.bf16 %v317_v44, %v315_v42 }
  0xe4   :  { %v320_v47 = vpack.c.bf16 %v318_v45, %v316_v43 }
  0xe5   :  { %412 = vmatmul.bf16.vlgmr.msra.gmra.mxu2 %v319_v46 }
  0xe6   :  { %426 = vmatmul.bf16.vlgmr.msra.gmra.mxu3 %v320_v47 }
 0x168   :  { %v413_v49 = vpop.f32.mrf.mxu2 }
 0x169   :  { %v427_v50 = vpop.f32.mrf.mxu3  ;;  %v414_v51 = vadd.f32 %v625_v48, %v413_v49 }
 0x16b   :  { %v428_v52 = vadd.f32 %v427_v50, %v414_v51 }
 0x16d   :  { %432 = vst [vmem:[#allocation11] sm:$0xff] %v428_v52 }
 0x170   :  { %v415_v53 = vpop.f32.mrf.mxu2 }
 0x171   :  { %v416_v54 = vadd.f32 %v625_v48, %v415_v53  ;;  %v429_v55 = vpop.f32.mrf.mxu3 }
 0x173   :  { %v430_v56 = vadd.f32 %v429_v55, %v416_v54 }
 0x175   :  { %433 = vst [vmem:[#allocation11 + $0x8] sm:$0xff] %v430_v56 }
 0x176   :  { %446 = dma.vmem_to_hbm [thread:$0]  %s439_s23, 256, %s441_s26, [#allocation4], %s782_s1, %s782_s1, %s783_s12  }
 0x177   :  { %776 = dma.done.wait [#allocation4], 256  }
 0x178   :  { %777 = vsyncadd [#allocation4], 4294967040 }
 0x179   :  { %451 = vsyncpa [#allocation3], 1 }
 0x17a   :  { %452 = vsyncpa [#allocation6], 1 }
 0x17b   :  { %453 = vsyncpa [#allocation9], 1 }
 0x17c   :  { %454 = vsyncpa [#allocation4], 1 }

</bundles_post_ra>
